<compile_context>
chip_gen: v5e
topology: v5e:2x2
jax: 0.10.0
libtpu: 0.0.40
codegen_flags: <defaults>
</compile_context>

<pallas_src>
import functools

import jax
import jax.numpy as jnp
from jax.experimental import pallas as pl
from jax.experimental.pallas import tpu as pltpu


def _vmem_capacity_bytes():
    try:
        info = pltpu.get_tpu_info()
        cap = getattr(info, "vmem_capacity_bytes", None)
        if cap:
            return int(cap)
    except Exception:
        pass
    return 64 << 20  # conservative (v7x per-core physical VMEM)


# --------------------- stage 1: LayerNorm + Q/K/V projections ---------------------

def _qkv_kernel(x_ref, lnw_ref, lnb_ref, wq_ref, wk_ref, wv_ref,
                q_ref, k_ref, v_ref):
    x = x_ref[...]                                          # (TR, C) f32
    mu = jnp.mean(x, axis=-1, keepdims=True)
    var = jnp.mean((x - mu) ** 2, axis=-1, keepdims=True)   # biased var (PyTorch LN)
    xn = (x - mu) * jax.lax.rsqrt(var + 1e-5) * lnw_ref[...] + lnb_ref[...]
    xb = xn.astype(jnp.bfloat16)
    # bf16 operands, f32 MXU accumulation. Weights pre-transposed; scale folded in Wq.
    q_ref[...] = jnp.dot(xb, wq_ref[...],
                         preferred_element_type=jnp.float32).astype(q_ref.dtype)
    k_ref[...] = jnp.dot(xb, wk_ref[...],
                         preferred_element_type=jnp.float32).astype(k_ref.dtype)
    v_ref[...] = jnp.dot(xb, wv_ref[...],
                         preferred_element_type=jnp.float32).astype(v_ref.dtype)


def _qkv_projection(x2d, prep, tr):
    R, C = x2d.shape
    f32, bf16 = 4, 2
    est = (2 * tr * C * f32 + 3 * 2 * tr * C * bf16 + 3 * C * C * bf16
           + 2 * C * f32 + 2 * tr * C * f32)
    vmem_limit = int(min(max(2 * est, 16 << 20), int(0.6 * _vmem_capacity_bytes())))
    return pl.pallas_call(
        _qkv_kernel,
        out_shape=tuple(jax.ShapeDtypeStruct((R, C), jnp.bfloat16) for _ in range(3)),
        grid=(pl.cdiv(R, tr),),
        in_specs=[
            pl.BlockSpec((tr, C), lambda r: (r, 0)),   # x rows
            pl.BlockSpec((1, C), lambda r: (0, 0)),    # ln weight
            pl.BlockSpec((1, C), lambda r: (0, 0)),    # ln bias
            pl.BlockSpec((C, C), lambda r: (0, 0)),    # Wq^T * scale (bf16)
            pl.BlockSpec((C, C), lambda r: (0, 0)),    # Wk^T (bf16)
            pl.BlockSpec((C, C), lambda r: (0, 0)),    # Wv^T (bf16)
        ],
        out_specs=tuple(pl.BlockSpec((tr, C), lambda r: (r, 0)) for _ in range(3)),
        compiler_params=pltpu.CompilerParams(
            dimension_semantics=("parallel",), vmem_limit_bytes=vmem_limit),
    )(x2d, prep["ln_w"], prep["ln_b"], prep["wq_t"], prep["wk_t"], prep["wv_t"])


# --------------- stage 2: flash attention + output projection + residual ---------------

def _attn_kernel(q_ref, k_ref, v_ref, xres_ref, wproj_ref, bproj_ref,
                 o_ref, m_sc, l_sc, acc_sc,
                 *, num_heads, kv_len, tk, need_kv_mask):
    kv_idx = pl.program_id(1)

    @pl.when(kv_idx == 0)
    def _():
        m_sc[...] = jnp.full_like(m_sc, -jnp.inf)
        l_sc[...] = jnp.zeros_like(l_sc)
        acc_sc[...] = jnp.zeros_like(acc_sc)

    q = q_ref[0]                                   # (TQ, C) bf16, scale pre-folded
    k = k_ref[0]                                   # (TK, C) bf16
    v = v_ref[0]                                   # (TK, C) bf16
    TQ, C = q.shape
    TK = k.shape[0]
    hd = C // num_heads

    qh = q.reshape(TQ, num_heads, hd)
    kh = k.reshape(TK, num_heads, hd)
    vh = v.reshape(TK, num_heads, hd)

    # Heads as batch dim of the contraction; no explicit relayouts.
    logits = jnp.einsum("qhd,khd->hqk", qh, kh,
                        preferred_element_type=jnp.float32)        # (H, TQ, TK) f32

    if need_kv_mask:
        kpos = kv_idx * tk + jax.lax.broadcasted_iota(jnp.int32, (1, 1, TK), 2)
        logits = jnp.where(kpos < kv_len, logits, -jnp.inf)

    m_prev = m_sc[...]                                             # (H, TQ, 1)
    m_new = jnp.maximum(m_prev, jnp.max(logits, axis=-1, keepdims=True))
    alpha = jnp.exp(m_prev - m_new)
    p = jnp.exp(logits - m_new)                                    # (H, TQ, TK) f32

    l_sc[...] = alpha * l_sc[...] + jnp.sum(p, axis=-1, keepdims=True)
    acc_sc[...] = alpha * acc_sc[...] + jnp.einsum(
        "hqk,khd->hqd", p.astype(jnp.bfloat16), vh,
        preferred_element_type=jnp.float32)                        # (H, TQ, hd)
    m_sc[...] = m_new

    @pl.when(kv_idx == pl.num_programs(1) - 1)
    def _():
        # Normalize the small (H,TQ,hd) accumulator with an EUP approx reciprocal.
        out_h = acc_sc[...] * pl.reciprocal(l_sc[...], approx=True)
        attn = out_h.transpose(1, 0, 2).reshape(TQ, C)             # (TQ, C)
        proj = jnp.dot(attn.astype(jnp.bfloat16), wproj_ref[...],
                       preferred_element_type=jnp.float32) + bproj_ref[...]  # (TQ, Cp)
        # Dropouts are identity in eval mode; residual add, lane-dense store.
        o_ref[0] = (xres_ref[0] + proj).astype(o_ref.dtype)


# ------------------------------ host-side wrappers ------------------------------

def prepare_params(params, num_heads):
    """One-time weight prep (hoisted out of the per-call path)."""
    C = params["proj_w"].shape[0]
    hd = C // num_heads
    scale = hd ** (-0.5)
    Cp = ((C + 127) // 128) * 128                  # lane-dense output width

    qkv_w = params["qkv_w"]                        # (3C, C) PyTorch layout
    wq_t = (qkv_w[:C].T * scale).astype(jnp.bfloat16)   # scale folded into Wq
    wk_t = qkv_w[C:2 * C].T.astype(jnp.bfloat16)
    wv_t = qkv_w[2 * C:].T.astype(jnp.bfloat16)

    wproj_t = params["proj_w"].T.astype(jnp.float32)     # (C, C)
    proj_b = jnp.asarray(params["proj_b"], jnp.float32).reshape(1, C)
    if Cp != C:
        wproj_t = jnp.pad(wproj_t, ((0, 0), (0, Cp - C)))
        proj_b = jnp.pad(proj_b, ((0, 0), (0, Cp - C)))

    return {
        "num_heads": num_heads, "C": C, "Cp": Cp,
        "ln_w": jnp.asarray(params["ln_w"], jnp.float32).reshape(1, C),
        "ln_b": jnp.asarray(params["ln_b"], jnp.float32).reshape(1, C),
        "wq_t": wq_t, "wk_t": wk_t, "wv_t": wv_t,
        "wproj_t": wproj_t.astype(jnp.bfloat16),
        "proj_b": proj_b,
    }


def mhsa_forward(x, prep, *, tq=None, tk=None, tr=None):
    """Forward of MultiHeadSelfAttention. x: (B, N, C)."""
    B, N, C = x.shape
    assert C == prep["C"]
    H = prep["num_heads"]
    hd = C // H
    Cp = prep["Cp"]

    # ---------------- stage 1: LN + QKV once per row ----------------
    R = B * N
    if tr is None:
        tr = R if R <= 512 else 512
    q2d, k2d, v2d = _qkv_projection(x.reshape(R, C).astype(jnp.float32), prep, tr)
    q = q2d.reshape(B, N, C)
    k = k2d.reshape(B, N, C)
    v = v2d.reshape(B, N, C)

    # ---------------- stage 2: flash attention + proj + residual ----------------
    if tq is None:
        tq = N if N <= 256 else 256   # TODO(synk): sweep 512 on v5e/v6e (more VMEM headroom than v7x)
    if tk is None:
        tk = N if N <= 512 else 512
    num_q_tiles = pl.cdiv(N, tq)
    num_kv_tiles = pl.cdiv(N, tk)
    need_kv_mask = (num_kv_tiles * tk != N)

    if Cp != C:
        x_res = jnp.pad(x.astype(jnp.float32), ((0, 0), (0, 0), (0, Cp - C)))
    else:
        x_res = x.astype(jnp.float32)

    f32, bf16 = 4, 2
    est = (2 * tq * C * bf16 + 2 * 2 * tk * C * bf16          # q/k/v blocks (dbl-buffered)
           + 2 * tq * Cp * f32 * 2                            # residual + out blocks
           + C * Cp * bf16 + Cp * f32                         # proj weights/bias
           + (2 * H * tq + H * tq * hd) * f32                 # m/l/acc scratch
           + 2 * H * tq * tk * f32                            # logits + exp(p)
           + 2 * tq * Cp * f32)                               # proj temporaries
    vmem_limit = int(min(max(2 * est, 16 << 20), int(0.6 * _vmem_capacity_bytes())))

    kernel = functools.partial(_attn_kernel, num_heads=H, kv_len=N, tk=tk,
                               need_kv_mask=need_kv_mask)

    # Flattened (batch * q-tile) "parallel" axis -> enough steps to feed both v7x
    # TensorCores; KV axis is the innermost "arbitrary" online-softmax reduction.
    qmap = lambda i, kv: (i // num_q_tiles, i % num_q_tiles, 0)
    kvmap = lambda i, kv: (i // num_q_tiles, kv, 0)
    wmap = lambda i, kv: (0, 0)

    out = pl.pallas_call(
        kernel,
        out_shape=jax.ShapeDtypeStruct((B, N, Cp), jnp.float32),
        grid_spec=pltpu.PrefetchScalarGridSpec(
            num_scalar_prefetch=0,
            grid=(B * num_q_tiles, num_kv_tiles),
            in_specs=[
                pl.BlockSpec((1, tq, C), qmap),    # q (bf16, scale folded)
                pl.BlockSpec((1, tk, C), kvmap),   # k (bf16)
                pl.BlockSpec((1, tk, C), kvmap),   # v (bf16)
                pl.BlockSpec((1, tq, Cp), qmap),   # residual x (lane-padded, f32)
                pl.BlockSpec((C, Cp), wmap),       # Wproj^T (lane-padded, bf16)
                pl.BlockSpec((1, Cp), wmap),       # proj bias (lane-padded, f32)
            ],
            out_specs=pl.BlockSpec((1, tq, Cp), qmap),
            scratch_shapes=[
                pltpu.VMEM((H, tq, 1), jnp.float32),    # running max
                pltpu.VMEM((H, tq, 1), jnp.float32),    # running denominator
                pltpu.VMEM((H, tq, hd), jnp.float32),   # running weighted sum
            ]),
        compiler_params=pltpu.CompilerParams(
            dimension_semantics=("parallel", "arbitrary"),
            vmem_limit_bytes=vmem_limit),
    )(q, k, v, x_res, prep["wproj_t"], prep["proj_b"])

    if Cp != C:
        out = out[:, :, :C]
    return out.astype(x.dtype)


def multi_head_self_attention(x, params, num_heads):
    return mhsa_forward(x, prepare_params(params, num_heads))


# --------------------------- pure-JAX reference ---------------------------

def _ref_forward(x, p, num_heads):
    B, N, C = x.shape
    hd = C // num_heads
    scale = hd ** (-0.5)

    def ln(v, g, b, eps=1e-5):
        mu = v.mean(-1, keepdims=True)
        var = ((v - mu) ** 2).mean(-1, keepdims=True)
        return (v - mu) / jnp.sqrt(var + eps) * g + b

    xn = ln(x, p["ln_w"], p["ln_b"])
    qkv = xn @ p["qkv_w"].T                                    # (B, N, 3C)
    qkv = qkv.reshape(B, N, 3, num_heads, hd).transpose(2, 0, 3, 1, 4)
    q, k, v = qkv[0], qkv[1], qkv[2]                           # (B, H, N, hd)
    attn = jnp.einsum("bhnd,bhmd->bhnm", q, k) * scale
    attn = jax.nn.softmax(attn, axis=-1)
    out = jnp.einsum("bhnm,bhmd->bhnd", attn, v)
    out = out.transpose(0, 2, 1, 3).reshape(B, N, C)
    out = out @ p["proj_w"].T + p["proj_b"]
    return x + out


# --------------------------------- main ---------------------------------

def _init_params(key, dim):
    ks = jax.random.split(key, 6)
    s = 0.02
    return {
        "ln_w": 1.0 + 0.1 * jax.random.normal(ks[0], (1, dim), jnp.float32),
        "ln_b": 0.1 * jax.random.normal(ks[1], (1, dim), jnp.float32),
        "qkv_w": s * jax.random.normal(ks[2], (3 * dim, dim), jnp.float32),  # bias=False
        "proj_w": s * jax.random.normal(ks[3], (dim, dim), jnp.float32),
        "proj_b": s * jax.random.normal(ks[4], (1, dim), jnp.float32),
    }


if __name__ == "__main__":
    B, N, C = 2, 8, 32            # batch, seq, dim
    num_heads = 8                 # head_dim = 4

    root = jax.random.PRNGKey(0)
    x = jax.random.normal(jax.random.fold_in(root, 1000), (B, N, C), jnp.float32)
    params = _init_params(jax.random.fold_in(root, 1), C)

    prep = prepare_params(params, num_heads)      # one-time weight prep
    y = mhsa_forward(x, prep)
    y = jax.block_until_ready(y)

    y_ref = _ref_forward(x, params, num_heads)
    assert y.shape == (B, N, C)
    assert jnp.allclose(y, y_ref, rtol=1e-2, atol=1e-2), "mismatch vs JAX reference"

    print("KERNEL_OK")
</pallas_src>

<mosaic_0001>
module attributes {stable_mosaic.version = 11 : i64} {
  func.func @_qkv_kernel(%arg0: i32, %arg1: memref<16x32xf32, #tpu.memory_space<vmem>>, %arg2: memref<1x32xf32, #tpu.memory_space<vmem>>, %arg3: memref<1x32xf32, #tpu.memory_space<vmem>>, %arg4: memref<32x32xbf16, #tpu.memory_space<vmem>>, %arg5: memref<32x32xbf16, #tpu.memory_space<vmem>>, %arg6: memref<32x32xbf16, #tpu.memory_space<vmem>>, %arg7: memref<16x32xbf16, #tpu.memory_space<vmem>>, %arg8: memref<16x32xbf16, #tpu.memory_space<vmem>>, %arg9: memref<16x32xbf16, #tpu.memory_space<vmem>>) attributes {dimension_semantics = [#tpu.dimension_semantics<parallel>], iteration_bounds = array<i64: 1>, scalar_prefetch = 0 : i64, scratch_operands = 0 : i64, tpu.core_type = #tpu.core_type<tc>, window_params = [{transform_indices = @transform_0, window_bounds = array<i64: 16, 32>}, {pipeline_mode = #tpu.pipeline_mode<synchronous>, transform_indices = @transform_1, window_bounds = array<i64: 1, 32>}, {pipeline_mode = #tpu.pipeline_mode<synchronous>, transform_indices = @transform_2, window_bounds = array<i64: 1, 32>}, {pipeline_mode = #tpu.pipeline_mode<synchronous>, transform_indices = @transform_3, window_bounds = array<i64: 32, 32>}, {pipeline_mode = #tpu.pipeline_mode<synchronous>, transform_indices = @transform_4, window_bounds = array<i64: 32, 32>}, {pipeline_mode = #tpu.pipeline_mode<synchronous>, transform_indices = @transform_5, window_bounds = array<i64: 32, 32>}, {transform_indices = @transform_6, window_bounds = array<i64: 16, 32>}, {transform_indices = @transform_7, window_bounds = array<i64: 16, 32>}, {transform_indices = @transform_8, window_bounds = array<i64: 16, 32>}]} {
    %c0 = arith.constant 0 : index
    %c0_0 = arith.constant 0 : index
    %0 = vector.load %arg1[%c0, %c0_0] : memref<16x32xf32, #tpu.memory_space<vmem>>, vector<16x32xf32>
    %cst = arith.constant dense<0.000000e+00> : vector<16xf32>
    %1 = vector.multi_reduction <add>, %0, %cst [1] : vector<16x32xf32> to vector<16xf32>
    %2 = vector.shape_cast %1 : vector<16xf32> to vector<16x1xf32>
    %cst_1 = arith.constant 3.200000e+01 : f32
    %3 = vector.broadcast %cst_1 : f32 to vector<16x1xf32>
    %4 = arith.divf %2, %3 : vector<16x1xf32>
    %5 = vector.broadcast %4 : vector<16x1xf32> to vector<16x32xf32>
    %6 = arith.subf %0, %5 : vector<16x32xf32>
    %7 = arith.mulf %6, %6 : vector<16x32xf32>
    %cst_2 = arith.constant dense<0.000000e+00> : vector<16xf32>
    %8 = vector.multi_reduction <add>, %7, %cst_2 [1] : vector<16x32xf32> to vector<16xf32>
    %9 = vector.shape_cast %8 : vector<16xf32> to vector<16x1xf32>
    %cst_3 = arith.constant 3.200000e+01 : f32
    %10 = vector.broadcast %cst_3 : f32 to vector<16x1xf32>
    %11 = arith.divf %9, %10 : vector<16x1xf32>
    %12 = vector.broadcast %4 : vector<16x1xf32> to vector<16x32xf32>
    %13 = arith.subf %0, %12 : vector<16x32xf32>
    %cst_4 = arith.constant 9.99999974E-6 : f32
    %14 = vector.broadcast %cst_4 : f32 to vector<16x1xf32>
    %15 = arith.addf %11, %14 : vector<16x1xf32>
    %16 = math.rsqrt %15 : vector<16x1xf32>
    %17 = vector.broadcast %16 : vector<16x1xf32> to vector<16x32xf32>
    %18 = arith.mulf %13, %17 : vector<16x32xf32>
    %c0_5 = arith.constant 0 : index
    %c0_6 = arith.constant 0 : index
    %19 = vector.load %arg2[%c0_5, %c0_6] : memref<1x32xf32, #tpu.memory_space<vmem>>, vector<1x32xf32>
    %20 = vector.broadcast %19 : vector<1x32xf32> to vector<16x32xf32>
    %21 = arith.mulf %18, %20 : vector<16x32xf32>
    %c0_7 = arith.constant 0 : index
    %c0_8 = arith.constant 0 : index
    %22 = vector.load %arg3[%c0_7, %c0_8] : memref<1x32xf32, #tpu.memory_space<vmem>>, vector<1x32xf32>
    %23 = vector.broadcast %22 : vector<1x32xf32> to vector<16x32xf32>
    %24 = arith.addf %21, %23 : vector<16x32xf32>
    %25 = arith.truncf %24 : vector<16x32xf32> to vector<16x32xbf16>
    %c0_9 = arith.constant 0 : index
    %c0_10 = arith.constant 0 : index
    %26 = vector.load %arg4[%c0_9, %c0_10] : memref<32x32xbf16, #tpu.memory_space<vmem>>, vector<32x32xbf16>
    %cst_11 = arith.constant dense<0.000000e+00> : vector<16x32xf32>
    %27 = tpu.matmul %25, %26, %cst_11 {dimension_numbers = #tpu.dot_dimension_numbers<[1], [0], [0], [1], [0, 0, 1, 1], [], []>} : vector<16x32xbf16>, vector<32x32xbf16>, vector<16x32xf32> -> vector<16x32xf32>
    %28 = arith.truncf %27 : vector<16x32xf32> to vector<16x32xbf16>
    %c0_12 = arith.constant 0 : index
    %c0_13 = arith.constant 0 : index
    %29 = vector.load %arg7[%c0_12, %c0_13] : memref<16x32xbf16, #tpu.memory_space<vmem>>, vector<16x32xbf16>
    tpu.vector_store %arg7[%c0_12, %c0_13], %28 {strides = array<i32>} : memref<16x32xbf16, #tpu.memory_space<vmem>>, vector<16x32xbf16>,
    %c0_14 = arith.constant 0 : index
    %c0_15 = arith.constant 0 : index
    %30 = vector.load %arg5[%c0_14, %c0_15] : memref<32x32xbf16, #tpu.memory_space<vmem>>, vector<32x32xbf16>
    %cst_16 = arith.constant dense<0.000000e+00> : vector<16x32xf32>
    %31 = tpu.matmul %25, %30, %cst_16 {dimension_numbers = #tpu.dot_dimension_numbers<[1], [0], [0], [1], [0, 0, 1, 1], [], []>} : vector<16x32xbf16>, vector<32x32xbf16>, vector<16x32xf32> -> vector<16x32xf32>
    %32 = arith.truncf %31 : vector<16x32xf32> to vector<16x32xbf16>
    %c0_17 = arith.constant 0 : index
    %c0_18 = arith.constant 0 : index
    %33 = vector.load %arg8[%c0_17, %c0_18] : memref<16x32xbf16, #tpu.memory_space<vmem>>, vector<16x32xbf16>
    tpu.vector_store %arg8[%c0_17, %c0_18], %32 {strides = array<i32>} : memref<16x32xbf16, #tpu.memory_space<vmem>>, vector<16x32xbf16>,
    %c0_19 = arith.constant 0 : index
    %c0_20 = arith.constant 0 : index
    %34 = vector.load %arg6[%c0_19, %c0_20] : memref<32x32xbf16, #tpu.memory_space<vmem>>, vector<32x32xbf16>
    %cst_21 = arith.constant dense<0.000000e+00> : vector<16x32xf32>
    %35 = tpu.matmul %25, %34, %cst_21 {dimension_numbers = #tpu.dot_dimension_numbers<[1], [0], [0], [1], [0, 0, 1, 1], [], []>} : vector<16x32xbf16>, vector<32x32xbf16>, vector<16x32xf32> -> vector<16x32xf32>
    %36 = arith.truncf %35 : vector<16x32xf32> to vector<16x32xbf16>
    %c0_22 = arith.constant 0 : index
    %c0_23 = arith.constant 0 : index
    %37 = vector.load %arg9[%c0_22, %c0_23] : memref<16x32xbf16, #tpu.memory_space<vmem>>, vector<16x32xbf16>
    tpu.vector_store %arg9[%c0_22, %c0_23], %36 {strides = array<i32>} : memref<16x32xbf16, #tpu.memory_space<vmem>>, vector<16x32xbf16>,
    return
  }
  func.func @transform_0(%arg0: i32) -> (i32, i32) {
    %c0_i32 = arith.constant 0 : i32
    %c0_i32_0 = arith.constant 0 : i32
    return %arg0, %c0_i32 : i32, i32
  }
  func.func @transform_1(%arg0: i32) -> (i32, i32) {
    %c0_i32 = arith.constant 0 : i32
    %c0_i32_0 = arith.constant 0 : i32
    %c0_i32_1 = arith.constant 0 : i32
    return %c0_i32, %c0_i32_0 : i32, i32
  }
  func.func @transform_2(%arg0: i32) -> (i32, i32) {
    %c0_i32 = arith.constant 0 : i32
    %c0_i32_0 = arith.constant 0 : i32
    %c0_i32_1 = arith.constant 0 : i32
    return %c0_i32, %c0_i32_0 : i32, i32
  }
  func.func @transform_3(%arg0: i32) -> (i32, i32) {
    %c0_i32 = arith.constant 0 : i32
    %c0_i32_0 = arith.constant 0 : i32
    %c0_i32_1 = arith.constant 0 : i32
    return %c0_i32, %c0_i32_0 : i32, i32
  }
  func.func @transform_4(%arg0: i32) -> (i32, i32) {
    %c0_i32 = arith.constant 0 : i32
    %c0_i32_0 = arith.constant 0 : i32
    %c0_i32_1 = arith.constant 0 : i32
    return %c0_i32, %c0_i32_0 : i32, i32
  }
  func.func @transform_5(%arg0: i32) -> (i32, i32) {
    %c0_i32 = arith.constant 0 : i32
    %c0_i32_0 = arith.constant 0 : i32
    %c0_i32_1 = arith.constant 0 : i32
    return %c0_i32, %c0_i32_0 : i32, i32
  }
  func.func @transform_6(%arg0: i32) -> (i32, i32) {
    %c0_i32 = arith.constant 0 : i32
    %c0_i32_0 = arith.constant 0 : i32
    return %arg0, %c0_i32 : i32, i32
  }
  func.func @transform_7(%arg0: i32) -> (i32, i32) {
    %c0_i32 = arith.constant 0 : i32
    %c0_i32_0 = arith.constant 0 : i32
    return %arg0, %c0_i32 : i32, i32
  }
  func.func @transform_8(%arg0: i32) -> (i32, i32) {
    %c0_i32 = arith.constant 0 : i32
    %c0_i32_0 = arith.constant 0 : i32
    return %arg0, %c0_i32 : i32, i32
  }
}

</mosaic_0001>

<bundles_post_ra>
// kernel: tpu_custom_call.1
= control target key start
LH: loop header
LB: loop body
LE: loop exit
PB: predicated region body
PF: predicated region fallthrough
CT: control target
= control target key end

     0   :  { %14 = vsyncpa [#allocation3], 0  ;;  %s706_s0 = inlined_call_operand.hbm [shape: f32[16,32], index: 0, kind: input, shape index: {}]   ;;  %s707_s1 = inlined_call_operand.hbm [shape: f32[1,32], index: 1, kind: input, shape index: {}]   ;;  %s708_s2 = inlined_call_operand.vmem [shape: f32[1,32], index: 2, kind: input, shape index: {}]   ;;  %s709_s3 = inlined_call_operand.hbm [shape: bf16[32,32], index: 3, kind: input, shape index: {}]   ;;  %s710_s4 = inlined_call_operand.hbm [shape: bf16[32,32], index: 4, kind: input, shape index: {}]   ;;  %s711_s5 = inlined_call_operand.hbm [shape: bf16[32,32], index: 5, kind: input, shape index: {}]   ;;  %s712_s6 = inlined_call_operand.hbm [shape: bf16[16,32], index: 6, kind: output, shape index: {0}]   ;;  %s713_s7 = inlined_call_operand.hbm [shape: bf16[16,32], index: 7, kind: output, shape index: {1}]   ;;  %s714_s8 = inlined_call_operand.hbm [shape: bf16[16,32], index: 8, kind: output, shape index: {2}]  }
   0x1   :  { %15 = vsyncpa [#allocation6], 0 }
   0x2   :  { %16 = vsyncpa [#allocation9], 0 }
   0x3   :  { %17 = vsyncpa [#allocation4], 0  ;;  %s37_s29 = sshll.u32 %s707_s1, 4  ;;  %s38_s29 = int_to_ptr.hbm [resolvable:$true] %s37_s29 }
   0x4   :  { %18 = vsyncpa [#allocation13], 0  ;;  %s590_s30 = smov [#allocation5]   ;;  %s62_s12 = sshll.u32 %s710_s4, 4  ;;  %s63_s12 = int_to_ptr.hbm [resolvable:$true] %s62_s12 }
   0x5   :  { %s39_s9 = sshll.u32 %s590_s30, 4  ;;  %s591_s13 = smov [#allocation8]   ;;  %s40_s9 = int_to_ptr.vmem [resolvable:$true] %s39_s9 }
   0x6   :  { %42 = dma.hbm_to_vmem [thread:$0]  %s38_s29, 16, %s40_s9, [#allocation6]  }
   0x7   :  { %s64_s14 = sshll.u32 %s591_s13, 4  ;;  %s23_s17 = sshll.u32 %s706_s0, 4  ;;  %s65_s14 = int_to_ptr.vmem [resolvable:$true] %s64_s14  ;;  %s24_s17 = int_to_ptr.hbm [resolvable:$true] %s23_s17 }
   0x8   :  { %s592_s1 = smov 64   ;;  %s593_s18 = smov 4  }
   0x9   :  { %70 = dma.hbm_to_vmem [thread:$0]  %s63_s12, 256, %s65_s14, [#allocation9], %s592_s1, %s592_s1, %s593_s18  }
   0xa   :  { %s594_s19 = smov [#allocation2]   ;;  %s49_s22 = sshll.u32 %s709_s3, 4  ;;  %s50_s22 = int_to_ptr.hbm [resolvable:$true] %s49_s22 }
   0xb   :  { %s25_s20 = sshll.u32 %s594_s19, 4  ;;  %s595_s23 = smov 128   ;;  %s26_s20 = int_to_ptr.vmem [resolvable:$true] %s25_s20 }
   0xc   :  { %s596_s24 = smov 8   ;;  %s597_s0 = smov [#allocation7]  }
   0xd   :  { %31 = dma.hbm_to_vmem [thread:$0]  %s24_s17, 256, %s26_s20, [#allocation3], %s595_s23, %s595_s23, %s596_s24  }
   0xe   :  { %s51_s25 = sshll.u32 %s597_s0, 4  ;;  %s75_s28 = sshll.u32 %s711_s5, 4  ;;  %s52_s25 = int_to_ptr.vmem [resolvable:$true] %s51_s25  ;;  %s76_s28 = int_to_ptr.hbm [resolvable:$true] %s75_s28 }
   0xf   :  { %57 = dma.hbm_to_vmem [thread:$0]  %s50_s22, 256, %s52_s25, [#allocation6], %s592_s1, %s592_s1, %s593_s18  }
  0x10   :  { %s598_s29 = smov [#allocation10]  }
  0x11   :  { %s77_s30 = sshll.u32 %s598_s29, 4  ;;  %s78_s30 = int_to_ptr.vmem [resolvable:$true] %s77_s30 }
  0x12   :  { %83 = dma.hbm_to_vmem [thread:$0]  %s76_s28, 256, %s78_s30, [#allocation9], %s592_s1, %s592_s1, %s593_s18  }
  0x13   :  { %580 = dma.done.wait [#allocation3], 256  }
  0x14   :  { %581 = vsyncadd [#allocation3], 4294967040 }
  0x15   :  { %582 = dma.done.wait [#allocation6], 272  }
  0x16   :  { %583 = vsyncadd [#allocation6], 4294967024 }
  0x17   :  { %584 = dma.done.wait [#allocation9], 512  }
  0x18   :  { %585 = vsyncadd [#allocation9], 4294966784  ;;  %vm107_vm0 = vcmask 261120   ;;  %v105_v0 = vld [vmem:[#allocation2] sm:$0xff]  ;;  %v106_v2 = vld [vmem:[#allocation2 + $0x8] sm:$0xff]  ;;  %v599_v4 = vmov 32.0  }
  0x19   :  { %v108_v1 = vsel %vm107_vm0, %v105_v0, 0.0  ;;  %v111_v3 = vsel %vm107_vm0, %v106_v2, 0.0  ;;  %382 = vrcp.f32 %v599_v4  ;;  %v362_v21 = vld [vmem:[#allocation7 + $0x8] sm:$0xff]  ;;  %v364_v22 = vld [vmem:[#allocation8 + $0x8] sm:$0xff]  ;;  %v361_v25 = vld [vmem:[#allocation7] sm:$0xff]  ;;  %vm207_vm8 = vcmask 257024  }
  0x1a   :  { %109 = vadd.xlane.f32.xlu0 %v108_v1  ;;  %v366_v23 = vld [vmem:[#allocation10 + $0x8] sm:$0xff]  ;;  %197 = vmatpush.bf16.msra.mxu0 %v362_v21  ;;  %v363_v26 = vld [vmem:[#allocation8] sm:$0xff]  ;;  %v365_v28 = vld [vmem:[#allocation10] sm:$0xff]  ;;  %s284_s12 = sshll.u32 %s712_s6, 4  ;;  %s601_s13 = smov [#allocation12]   ;;  %s285_s12 = int_to_ptr.hbm [resolvable:$true] %s284_s12 }
  0x1b   :  { %232 = vmatpush.bf16.msra.mxu1 %v364_v22  ;;  %266 = vmatpush.bf16.msra.mxu2 %v366_v23  ;;  %v380_v46 = vld [vmem:[#allocation5] ss:$0 sm:$0xff]  ;;  %v381_v51 = vld [vmem:[%s708_s2] ss:$0 sm:$0xff]  ;;  %s600_s2 = smov [#allocation11]   ;;  %s295_s14 = sshll.u32 %s601_s13, 4  ;;  %s296_s14 = int_to_ptr.vmem [resolvable:$true] %s295_s14 }
  0x1c   :  { %s282_s9 = sshll.u32 %s600_s2, 4  ;;  %s297_s17 = sshll.u32 %s713_s7, 4  ;;  %s283_s9 = int_to_ptr.vmem [resolvable:$true] %s282_s9  ;;  %s298_s17 = int_to_ptr.hbm [resolvable:$true] %s297_s17 }
  0x1d   :  { %s602_s6 = smov [#allocation14]   ;;  %s310_s4 = sshll.u32 %s714_s8, 4  ;;  %s311_s4 = int_to_ptr.hbm [resolvable:$true] %s310_s4 }
  0x1e   :  { %198 = vmatpush.bf16.msra.mxu0 %v361_v25  ;;  %s308_s19 = sshll.u32 %s602_s6, 4  ;;  %s309_s19 = int_to_ptr.vmem [resolvable:$true] %s308_s19 }
  0x1f   :  { %v383_v5 = vpop.eup %382  ;;  %233 = vmatpush.bf16.msra.mxu1 %v363_v26  ;;  %267 = vmatpush.bf16.msra.mxu2 %v365_v28 }
  0x20   :  { %v115_v6 = vmul.f32 32.0, %v383_v5  ;;  %vm119_vm1 = vweird.f32 %v383_v5 }
  0x22   :  { %112 = vadd.xlane.f32.xlu0 %v111_v3  ;;  %v116_v7 = vsub.f32 1.0, %v115_v6 }
  0x24   :  { %v117_v8 = vmul.f32 %v383_v5, %v116_v7 }
  0x26   :  { %v118_v9 = vadd.f32 %v383_v5, %v117_v8 }
  0x28   :  { %v120_v10 = vsel %vm119_vm1, %v383_v5, %v118_v9 }
  0x8d   :  { %v110_v11 = vpop.xlane.xlu0 %109 }
  0x8e   :  { %v121_v12 = vmul.f32 %v120_v10, %v110_v11 }
  0x90   :  { %v123_v13 = vsub.f32 %v105_v0, %v121_v12 }
  0x92   :  { %v125_v14 = vmul.f32 %v123_v13, %v123_v13 }
  0x94   :  { %v127_v15 = vsel %vm107_vm0, %v125_v14, 0.0 }
  0x95   :  { %128 = vadd.xlane.f32.xlu1 %v127_v15  ;;  %v113_v16 = vpop.xlane.xlu0 %112 }
  0x96   :  { %v122_v17 = vmul.f32 %v120_v10, %v113_v16 }
  0x98   :  { %v124_v18 = vsub.f32 %v106_v2, %v122_v17 }
  0x9a   :  { %v126_v19 = vmul.f32 %v124_v18, %v124_v18 }
  0x9c   :  { %v130_v20 = vsel %vm107_vm0, %v126_v19, 0.0 }
  0x9d   :  { %131 = vadd.xlane.f32.xlu1 %v130_v20 }
 0x108   :  { %v129_v24 = vpop.xlane.xlu1 %128 }
 0x109   :  { %v133_v27 = vmul.f32 %v129_v24, %v120_v10 }
 0x10b   :  { %v135_v29 = vadd.f32 1e-05, %v133_v27 }
 0x10d   :  { %384 = vrsqrt.f32 %v135_v29  ;;  %vm143_vm3 = vweird.f32 %v135_v29 }
 0x110   :  { %v132_v30 = vpop.xlane.xlu1 %131 }
 0x111   :  { %v134_v31 = vmul.f32 %v132_v30, %v120_v10 }
 0x113   :  { %v385_v32 = vpop.eup %384  ;;  %v136_v33 = vadd.f32 1e-05, %v134_v31 }
 0x114   :  { %v138_v34 = vmul.f32 %v385_v32, %v135_v29  ;;  %vm144_vm2 = vweird.f32 %v385_v32 }
 0x115   :  { %386 = vrsqrt.f32 %v136_v33  ;;  %vm145_vm4 = vmor %vm143_vm3, %vm144_vm2  ;;  %vm153_vm6 = vweird.f32 %v136_v33 }
 0x116   :  { %v139_v35 = vmul.f32 %v385_v32, %v138_v34 }
 0x118   :  { %v140_v36 = vmul.f32 0.5, %v139_v35 }
 0x11a   :  { %v141_v37 = vsub.f32 1.5, %v140_v36 }
 0x11b   :  { %v387_v38 = vpop.eup %386 }
 0x11c   :  { %v142_v39 = vmul.f32 %v385_v32, %v141_v37  ;;  %v148_v40 = vmul.f32 %v387_v38, %v136_v33  ;;  %vm154_vm5 = vweird.f32 %v387_v38 }
 0x11d   :  { %vm155_vm7 = vmor %vm153_vm6, %vm154_vm5 }
 0x11e   :  { %v149_v41 = vmul.f32 %v387_v38, %v148_v40  ;;  %v146_v42 = vsel %vm145_vm4, %v385_v32, %v142_v39 }
 0x11f   :  { %v157_v45 = vmul.f32 %v146_v42, %v123_v13 }
 0x120   :  { %v150_v43 = vmul.f32 0.5, %v149_v41 }
 0x121   :  { %v163_v50 = vmul.f32 %v380_v46, %v157_v45 }
 0x122   :  { %v151_v44 = vsub.f32 1.5, %v150_v43 }
 0x123   :  { %v169_v53 = vadd.f32 %v381_v51, %v163_v50 }
 0x124   :  { %v152_v47 = vmul.f32 %v387_v38, %v151_v44 }
 0x126   :  { %v156_v48 = vsel %vm155_vm7, %v387_v38, %v152_v47 }
 0x127   :  { %v158_v49 = vmul.f32 %v156_v48, %v124_v18 }
 0x129   :  { %v164_v52 = vmul.f32 %v380_v46, %v158_v49 }
 0x12b   :  { %v170_v54 = vadd.f32 %v381_v51, %v164_v52 }
 0x12d   :  { %v171_v55 = vpack.c.bf16 %v170_v54, %v169_v53 }
 0x12f   :  { %342 = vmatmul.msk.bf16.vlgmr.msra.gmra.mxu0 %vm107_vm0, %v171_v55  ;;  %351 = vmatmul.msk.bf16.vlgmr.msra.gmra.mxu1 %vm107_vm0, %v171_v55 }
 0x130   :  { %360 = vmatmul.msk.bf16.vlgmr.msra.gmra.mxu2 %vm107_vm0, %v171_v55 }
 0x1ac   :  { %v200_v56 = vpop.f32.mrf.mxu0  ;;  %v235_v57 = vpop.f32.mrf.mxu1 }
 0x1ad   :  { %v205_v58 = vpack.c.bf16 %v200_v56, %v200_v56  ;;  %v240_v59 = vpack.c.bf16 %v235_v57, %v235_v57 }
 0x1af   :  { %208 = vst.msk [vmem:[#allocation11] sm:$0xf] %vm207_vm8, %v205_v58 }
 0x1b0   :  { %242 = vst.msk [vmem:[#allocation12] sm:$0xf] %vm207_vm8, %v240_v59 }
 0x1b3   :  { %v269_v60 = vpop.f32.mrf.mxu2 }
 0x1b4   :  { %v274_v61 = vpack.c.bf16 %v269_v60, %v269_v60  ;;  %v202_v62 = vpop.f32.mrf.mxu0  ;;  %v237_v63 = vpop.f32.mrf.mxu1 }
 0x1b5   :  { %v206_v0 = vpack.c.bf16 %v202_v62, %v202_v62  ;;  %v241_v1 = vpack.c.bf16 %v237_v63, %v237_v63 }
 0x1b6   :  { %276 = vst.msk [vmem:[#allocation14] sm:$0xf] %vm207_vm8, %v274_v61 }
 0x1b7   :  { %209 = vst.msk [vmem:[#allocation11 + $0x4] sm:$0xf] %vm207_vm8, %v206_v0 }
 0x1b8   :  { %243 = vst.msk [vmem:[#allocation12 + $0x4] sm:$0xf] %vm207_vm8, %v241_v1  ;;  %290 = dma.vmem_to_hbm [thread:$0]  %s283_s9, 128, %s285_s12, [#allocation4], %s592_s1, %s592_s1, %s593_s18  }
 0x1b9   :  { %303 = dma.vmem_to_hbm [thread:$0]  %s296_s14, 128, %s298_s17, [#allocation13], %s592_s1, %s592_s1, %s593_s18  }
 0x1bb   :  { %v271_v2 = vpop.f32.mrf.mxu2 }
 0x1bc   :  { %v275_v3 = vpack.c.bf16 %v271_v2, %v271_v2 }
 0x1be   :  { %277 = vst.msk [vmem:[#allocation14 + $0x4] sm:$0xf] %vm207_vm8, %v275_v3 }
 0x1bf   :  { %316 = dma.vmem_to_hbm [thread:$0]  %s309_s19, 128, %s311_s4, [#allocation13], %s592_s1, %s592_s1, %s593_s18  }
 0x1c0   :  { %586 = dma.done.wait [#allocation4], 128  }
 0x1c1   :  { %587 = vsyncadd [#allocation4], 4294967168 }
 0x1c2   :  { %588 = dma.done.wait [#allocation13], 256  }
 0x1c3   :  { %589 = vsyncadd [#allocation13], 4294967040 }
 0x1c4   :  { %329 = vsyncpa [#allocation3], 1 }
 0x1c5   :  { %330 = vsyncpa [#allocation6], 1 }
 0x1c6   :  { %331 = vsyncpa [#allocation9], 1 }
 0x1c7   :  { %332 = vsyncpa [#allocation4], 1 }
 0x1c8   :  { %333 = vsyncpa [#allocation13], 1 }

</bundles_post_ra>
